<compile_context>
chip_gen: v7x
topology: tpu7x:2x2x1
jax: 0.10.0
libtpu: 0.0.40
codegen_flags: <defaults>
</compile_context>

<pallas_src>
import functools

import jax
import jax.numpy as jnp
from jax.experimental import pallas as pl
from jax.experimental.pallas import tpu as pltpu


def _topk_act_kernel(x_ref, o_ref, *, k):
    """Block layout: (C, T) — channels on sublanes, pixels on lanes."""
    x = jnp.maximum(x_ref[...].astype(jnp.float32), 0.0)          # (C, T)
    T = x.shape[1]
    neg_inf = jnp.float32(-jnp.inf)

    # Per-lane (per-pixel) state for the tie-aware selection:
    #   thr      : found (k+1)-th largest value (-inf until found)
    #   removed  : #elements already peeled off (strictly greater than prev_max)
    #   prev_max : value of the last peeled tie group (+inf initially)
    thr0 = jnp.full((1, T), neg_inf, jnp.float32)
    removed0 = jnp.zeros((1, T), jnp.float32)
    prev0 = jnp.full((1, T), jnp.inf, jnp.float32)

    def body(_, carry):
        thr, removed, prev_max = carry
        found = thr != neg_inf                                     # (1, T)
        active = x < prev_max                                      # (C, T)
        m = jnp.max(jnp.where(active, x, neg_inf), axis=0, keepdims=True)
        c_eq = jnp.sum(jnp.where(active & (x == m), 1.0, 0.0),
                       axis=0, keepdims=True)                      # f32 count
        hit = (removed + c_eq) > (k + 0.5)   # count(x >= m) >= k+1 ?
        done = found | hit
        thr = jnp.where(jnp.logical_not(found) & hit, m, thr)
        removed = jnp.where(done, removed, removed + c_eq)
        prev_max = jnp.where(done, prev_max, m)
        return thr, removed, prev_max

    # Exactly k+1 passes always suffice (each non-hit pass removes >= 1 elem).
    thr, _, _ = jax.lax.fori_loop(0, k + 1, body, (thr0, removed0, prev0),
                                  unroll=(k + 1 <= 8))

    o_ref[...] = jnp.maximum(x - thr, 0.0).astype(o_ref.dtype)


def _pick_tile_hw(hw, c, itemsize, block_budget_bytes):
    """Largest lane tile that (a) keeps one (C, tile) block within budget,
    (b) is a multiple of 128 (or the full extent), (c) divides HW when
    possible so no padding copy is needed."""
    max_lanes = max(128, (block_budget_bytes // (c * itemsize)) // 128 * 128)
    if hw <= max_lanes:
        return hw, hw                       # one tile per (b) block, no pad
    t = max_lanes
    while t >= 128:                         # prefer an exact divisor -> no pad
        if hw % t == 0:
            return t, hw
        t -= 128
    t = max_lanes                           # rare fallback: pad HW
    return t, pl.cdiv(hw, t) * t


def topk_activation(x, k, *, block_budget_bytes=4 * 1024 * 1024):
    """x: (B, C, H, W) array (NCHW, same as PyTorch). Returns same shape/dtype."""
    B, C, H, W = x.shape
    assert k + 1 <= C, "need k+1 <= number of channels (torch.topk constraint)"
    HW = H * W

    tile_hw, HWp = _pick_tile_hw(HW, C, x.dtype.itemsize, block_budget_bytes)

    # NCHW is already contiguous as (B, C, H*W): no transpose needed.
    x3 = x.reshape(B, C, HW)
    if HWp != HW:
        # TODO(synk): padded pixels compute harmless zeros and are sliced away.
        x3 = jnp.pad(x3, ((0, 0), (0, 0), (0, HWp - HW)))

    num_tiles = HWp // tile_hw
    out = pl.pallas_call(
        functools.partial(_topk_act_kernel, k=k),
        out_shape=jax.ShapeDtypeStruct((B, C, HWp), x.dtype),
        grid=(B, num_tiles),
        in_specs=[pl.BlockSpec((None, C, tile_hw), lambda b, j: (b, 0, j))],
        out_specs=pl.BlockSpec((None, C, tile_hw), lambda b, j: (b, 0, j)),
        compiler_params=pltpu.CompilerParams(
            dimension_semantics=("parallel", "parallel"),
            vmem_limit_bytes=32 * 1024 * 1024,
        ),
    )(x3)

    if HWp != HW:
        out = out[:, :, :HW]
    return out.reshape(B, C, H, W)


def _reference(x, k):
    # pure-JAX reference mirroring the PyTorch module
    xr = jnp.maximum(x, 0.0)
    sorted_desc = jnp.sort(xr, axis=1)[:, ::-1]     # sorted descending on C
    thr = sorted_desc[:, k:k + 1]                   # (k+1)-th largest, keepdim
    return jnp.maximum(xr - thr, 0.0)


if __name__ == "__main__":
    key = jax.random.PRNGKey(0)
    B, C, H, W = 2, 4, 16, 16
    k = 2
    x = jax.random.normal(key, (B, C, H, W), dtype=jnp.float32)

    out = jax.block_until_ready(topk_activation(x, k))

    ref = _reference(x, k)
    assert out.shape == (B, C, H, W)
    assert jnp.allclose(out, ref, atol=1e-6), "mismatch vs reference"

    print("KERNEL_OK")
</pallas_src>

<mosaic_0001>
module attributes {stable_mosaic.version = 11 : i64} {
  func.func @_topk_act_kernel(%arg0: i32, %arg1: i32, %arg2: memref<1x4x256xf32, #tpu.memory_space<vmem>>, %arg3: memref<1x4x256xf32, #tpu.memory_space<vmem>>) attributes {dimension_semantics = [#tpu.dimension_semantics<parallel>, #tpu.dimension_semantics<parallel>], iteration_bounds = array<i64: 2, 1>, scalar_prefetch = 0 : i64, scratch_operands = 0 : i64, tpu.core_type = #tpu.core_type<tc>, window_params = [{transform_indices = @transform_0, window_bounds = array<i64: 1, 4, 256>}, {transform_indices = @transform_1, window_bounds = array<i64: 1, 4, 256>}]} {
    %c0 = arith.constant 0 : index
    %c0_0 = arith.constant 0 : index
    %c0_1 = arith.constant 0 : index
    %0 = vector.load %arg2[%c0, %c0_0, %c0_1] : memref<1x4x256xf32, #tpu.memory_space<vmem>>, vector<1x4x256xf32>
    %1 = vector.shape_cast %0 : vector<1x4x256xf32> to vector<4x256xf32>
    %cst = arith.constant 0.000000e+00 : f32
    %2 = vector.broadcast %cst : f32 to vector<4x256xf32>
    %3 = arith.maximumf %1, %2 : vector<4x256xf32>
    %cst_2 = arith.constant 0xFF800000 : f32
    %4 = vector.broadcast %cst_2 : f32 to vector<1x256xf32>
    %cst_3 = arith.constant 0.000000e+00 : f32
    %5 = vector.broadcast %cst_3 : f32 to vector<1x256xf32>
    %cst_4 = arith.constant 0x7F800000 : f32
    %6 = vector.broadcast %cst_4 : f32 to vector<1x256xf32>
    %cst_5 = arith.constant 0xFF800000 : f32
    %c0_i32 = arith.constant 0 : i32
    %7 = vector.broadcast %cst_5 : f32 to vector<1x256xf32>
    %8 = arith.cmpf one, %4, %7 : vector<1x256xf32>
    %9 = vector.broadcast %6 : vector<1x256xf32> to vector<4x256xf32>
    %10 = arith.cmpf olt, %3, %9 : vector<4x256xf32>
    %11 = vector.broadcast %cst_5 : f32 to vector<4x256xf32>
    %12 = arith.select %10, %3, %11 : vector<4x256xi1>, vector<4x256xf32>
    %cst_6 = arith.constant dense<0xFF800000> : vector<256xf32>
    %13 = vector.multi_reduction <maximumf>, %12, %cst_6 [0] : vector<4x256xf32> to vector<256xf32>
    %14 = vector.shape_cast %13 : vector<256xf32> to vector<1x256xf32>
    %15 = vector.broadcast %14 : vector<1x256xf32> to vector<4x256xf32>
    %16 = arith.cmpf oeq, %3, %15 : vector<4x256xf32>
    %17 = arith.andi %10, %16 : vector<4x256xi1>
    %cst_7 = arith.constant 1.000000e+00 : f32
    %cst_8 = arith.constant 0.000000e+00 : f32
    %18 = vector.broadcast %cst_7 : f32 to vector<4x256xf32>
    %19 = vector.broadcast %cst_8 : f32 to vector<4x256xf32>
    %20 = arith.select %17, %18, %19 : vector<4x256xi1>, vector<4x256xf32>
    %cst_9 = arith.constant dense<0.000000e+00> : vector<256xf32>
    %21 = vector.multi_reduction <add>, %20, %cst_9 [0] : vector<4x256xf32> to vector<256xf32>
    %22 = vector.shape_cast %21 : vector<256xf32> to vector<1x256xf32>
    %23 = arith.addf %5, %22 : vector<1x256xf32>
    %cst_10 = arith.constant 2.500000e+00 : f32
    %24 = vector.broadcast %cst_10 : f32 to vector<1x256xf32>
    %25 = arith.cmpf ogt, %23, %24 : vector<1x256xf32>
    %26 = arith.ori %8, %25 : vector<1x256xi1>
    %cst_11 = arith.constant dense<true> : vector<1x256xi1>
    %27 = arith.xori %8, %cst_11 : vector<1x256xi1>
    %28 = arith.andi %27, %25 : vector<1x256xi1>
    %29 = arith.select %28, %14, %4 : vector<1x256xi1>, vector<1x256xf32>
    %30 = arith.addf %5, %22 : vector<1x256xf32>
    %31 = arith.select %26, %5, %30 : vector<1x256xi1>, vector<1x256xf32>
    %32 = arith.select %26, %6, %14 : vector<1x256xi1>, vector<1x256xf32>
    %c1_i32 = arith.constant 1 : i32
    %33 = vector.broadcast %cst_5 : f32 to vector<1x256xf32>
    %34 = arith.cmpf one, %29, %33 : vector<1x256xf32>
    %35 = vector.broadcast %32 : vector<1x256xf32> to vector<4x256xf32>
    %36 = arith.cmpf olt, %3, %35 : vector<4x256xf32>
    %37 = vector.broadcast %cst_5 : f32 to vector<4x256xf32>
    %38 = arith.select %36, %3, %37 : vector<4x256xi1>, vector<4x256xf32>
    %cst_12 = arith.constant dense<0xFF800000> : vector<256xf32>
    %39 = vector.multi_reduction <maximumf>, %38, %cst_12 [0] : vector<4x256xf32> to vector<256xf32>
    %40 = vector.shape_cast %39 : vector<256xf32> to vector<1x256xf32>
    %41 = vector.broadcast %40 : vector<1x256xf32> to vector<4x256xf32>
    %42 = arith.cmpf oeq, %3, %41 : vector<4x256xf32>
    %43 = arith.andi %36, %42 : vector<4x256xi1>
    %cst_13 = arith.constant 1.000000e+00 : f32
    %cst_14 = arith.constant 0.000000e+00 : f32
    %44 = vector.broadcast %cst_13 : f32 to vector<4x256xf32>
    %45 = vector.broadcast %cst_14 : f32 to vector<4x256xf32>
    %46 = arith.select %43, %44, %45 : vector<4x256xi1>, vector<4x256xf32>
    %cst_15 = arith.constant dense<0.000000e+00> : vector<256xf32>
    %47 = vector.multi_reduction <add>, %46, %cst_15 [0] : vector<4x256xf32> to vector<256xf32>
    %48 = vector.shape_cast %47 : vector<256xf32> to vector<1x256xf32>
    %49 = arith.addf %31, %48 : vector<1x256xf32>
    %cst_16 = arith.constant 2.500000e+00 : f32
    %50 = vector.broadcast %cst_16 : f32 to vector<1x256xf32>
    %51 = arith.cmpf ogt, %49, %50 : vector<1x256xf32>
    %52 = arith.ori %34, %51 : vector<1x256xi1>
    %cst_17 = arith.constant dense<true> : vector<1x256xi1>
    %53 = arith.xori %34, %cst_17 : vector<1x256xi1>
    %54 = arith.andi %53, %51 : vector<1x256xi1>
    %55 = arith.select %54, %40, %29 : vector<1x256xi1>, vector<1x256xf32>
    %56 = arith.addf %31, %48 : vector<1x256xf32>
    %57 = arith.select %52, %31, %56 : vector<1x256xi1>, vector<1x256xf32>
    %58 = arith.select %52, %32, %40 : vector<1x256xi1>, vector<1x256xf32>
    %c2_i32 = arith.constant 2 : i32
    %59 = vector.broadcast %cst_5 : f32 to vector<1x256xf32>
    %60 = arith.cmpf one, %55, %59 : vector<1x256xf32>
    %61 = vector.broadcast %58 : vector<1x256xf32> to vector<4x256xf32>
    %62 = arith.cmpf olt, %3, %61 : vector<4x256xf32>
    %63 = vector.broadcast %cst_5 : f32 to vector<4x256xf32>
    %64 = arith.select %62, %3, %63 : vector<4x256xi1>, vector<4x256xf32>
    %cst_18 = arith.constant dense<0xFF800000> : vector<256xf32>
    %65 = vector.multi_reduction <maximumf>, %64, %cst_18 [0] : vector<4x256xf32> to vector<256xf32>
    %66 = vector.shape_cast %65 : vector<256xf32> to vector<1x256xf32>
    %67 = vector.broadcast %66 : vector<1x256xf32> to vector<4x256xf32>
    %68 = arith.cmpf oeq, %3, %67 : vector<4x256xf32>
    %69 = arith.andi %62, %68 : vector<4x256xi1>
    %cst_19 = arith.constant 1.000000e+00 : f32
    %cst_20 = arith.constant 0.000000e+00 : f32
    %70 = vector.broadcast %cst_19 : f32 to vector<4x256xf32>
    %71 = vector.broadcast %cst_20 : f32 to vector<4x256xf32>
    %72 = arith.select %69, %70, %71 : vector<4x256xi1>, vector<4x256xf32>
    %cst_21 = arith.constant dense<0.000000e+00> : vector<256xf32>
    %73 = vector.multi_reduction <add>, %72, %cst_21 [0] : vector<4x256xf32> to vector<256xf32>
    %74 = vector.shape_cast %73 : vector<256xf32> to vector<1x256xf32>
    %75 = arith.addf %57, %74 : vector<1x256xf32>
    %cst_22 = arith.constant 2.500000e+00 : f32
    %76 = vector.broadcast %cst_22 : f32 to vector<1x256xf32>
    %77 = arith.cmpf ogt, %75, %76 : vector<1x256xf32>
    %78 = arith.ori %60, %77 : vector<1x256xi1>
    %cst_23 = arith.constant dense<true> : vector<1x256xi1>
    %79 = arith.xori %60, %cst_23 : vector<1x256xi1>
    %80 = arith.andi %79, %77 : vector<1x256xi1>
    %81 = arith.select %80, %66, %55 : vector<1x256xi1>, vector<1x256xf32>
    %82 = arith.addf %57, %74 : vector<1x256xf32>
    %83 = arith.select %78, %57, %82 : vector<1x256xi1>, vector<1x256xf32>
    %84 = arith.select %78, %58, %66 : vector<1x256xi1>, vector<1x256xf32>
    %85 = vector.broadcast %81 : vector<1x256xf32> to vector<4x256xf32>
    %86 = arith.subf %3, %85 : vector<4x256xf32>
    %cst_24 = arith.constant 0.000000e+00 : f32
    %87 = vector.broadcast %cst_24 : f32 to vector<4x256xf32>
    %88 = arith.maximumf %86, %87 : vector<4x256xf32>
    %c0_25 = arith.constant 0 : index
    %c0_26 = arith.constant 0 : index
    %c0_27 = arith.constant 0 : index
    %89 = vector.load %arg3[%c0_25, %c0_26, %c0_27] : memref<1x4x256xf32, #tpu.memory_space<vmem>>, vector<1x4x256xf32>
    %90 = vector.shape_cast %89 : vector<1x4x256xf32> to vector<4x256xf32>
    %91 = vector.shape_cast %88 : vector<4x256xf32> to vector<1x4x256xf32>
    tpu.vector_store %arg3[%c0_25, %c0_26, %c0_27], %91 {strides = array<i32>} : memref<1x4x256xf32, #tpu.memory_space<vmem>>, vector<1x4x256xf32>,
    return
  }
  func.func @transform_0(%arg0: i32, %arg1: i32) -> (i32, i32, i32) {
    %c0_i32 = arith.constant 0 : i32
    %c0_i32_0 = arith.constant 0 : i32
    return %arg0, %c0_i32, %arg1 : i32, i32, i32
  }
  func.func @transform_1(%arg0: i32, %arg1: i32) -> (i32, i32, i32) {
    %c0_i32 = arith.constant 0 : i32
    %c0_i32_0 = arith.constant 0 : i32
    return %arg0, %c0_i32, %arg1 : i32, i32, i32
  }
}

</mosaic_0001>

<bundles_post_ra>
// kernel: tpu_custom_call.1
= control target key start
LH: loop header
LB: loop body
LE: loop exit
PB: predicated region body
PF: predicated region fallthrough
CT: control target
= control target key end

     0   :  { %6 = vsyncpa [#allocation3], 0  ;;  %s932_s0 = inlined_call_operand.hbm [shape: f32[2,4,256], index: 0, kind: input, shape index: {}]   ;;  %s933_s1 = inlined_call_operand.hbm [shape: f32[2,4,256], index: 1, kind: output, shape index: {}]  }
   0x1   :  { %8 = vsyncpa [#allocation3 + $0x1], 0 }
   0x2   :  { %9 = vsyncpa [#allocation4], 0 }
   0x3   :  { %11 = vsyncpa [#allocation4 + $0x1], 0  ;;  %s656_s6 = smov 0   ;;  %s658_s7 = smov 0  }
   0x4   :  { %s660_s8 = smov 0   ;;  %s662_s9 = smov 0  }
   0x5   :  { %s664_s10 = smov 0   ;;  %s666_s11 = smov 0  }
   0x6 LB: > { %s447_s12 = sadd.s32 4294967295, %s640_s11   ;;  %s448_s13 = sadd.s32 4294967294, %s640_s11   ;;  %s640_s11 = sphi %s666_s11, %s17_s11   ;;  %s636_s10 = sphi %s664_s10, %s955_s10   ;;  %s632_s9 = sphi %s662_s9, %s954_s9   ;;  %s628_s8 = sphi %s660_s8, %s953_s8   ;;  %s624_s7 = sphi %s658_s7, %s952_s7   ;;  %s620_s6 = sphi %s656_s6, %s951_s6  }
   0x7   : > { %s29_s14 = sadd.s32 1, %s636_s10  ;;  %s38_s15 = sadd.s32 1, %s628_s8 }
   0x8   : > { %p31_p0 = scmp.ge.s32.totalorder %s29_s14, 2  ;;  %p45_p1 = scmp.ne.s32.totalorder %s628_s8, %s624_s7 }
   0x9   : > { %p46_p2 = scmp.eq.s32.totalorder %s640_s11, 0  ;;  %p51_p3 = scmp.ne.s32.totalorder %s624_s7, %s620_s6 }
   0xa   : > { %s957_s14 = smov (%p31_p0, %s29_s14), 0  ;;  %p52_p5 = scmp.eq.s32.totalorder %s447_s12, 0 }
   0xb   : > { %p697_p4 = por %p46_p2, %p45_p1  ;;  %s33_s17 = ssub.s32 %s636_s10, %s957_s14 }
   0xc   : > { %p77_p6 = scmp.eq.s32.totalorder %s447_s12, 1  ;;  %p36_p7 = scmp.eq.s32.totalorder %s33_s17, 0 }
   0xd   : > { %p703_p8 = por %p52_p5, %p51_p3  ;;  %p83_p10 = scmp.eq.s32.totalorder %s448_s13, 1 }
   0xe   : > { %p707_p9 = por %p77_p6, %p45_p1  ;;  %p476_p13 = scmp.lt.s32.totalorder %s640_s11, 2 }
   0xf   : > { %s712_s20 = scalar_select %p36_p7, %s628_s8, %s38_s15  }
  0x10   : > { %s937_s19 = scalar_select %p707_p9, 1, 0 }
  0x11   : > { %p714_p11 = por %p83_p10, %p51_p3  ;;  %s103_s22 = sand.u32 1, %s628_s8  }
  0x12   : > { %s451_s23 = sshll.u32 %s103_s22, 3  ;;  %s462_s24 = sshll.u32 %s636_s10, 7 }
  0x13   : > { %s938_s21 = scalar_select %p714_p11, 1, 0 }
  0x14   : > { %s725_s27 = scalar_lea.hbm %s932_s0, %s462_s24  ;;  %s107_s28 = scalar_lea.vmem [#allocation2], %s451_s23 }
  0x15   : > { %s117_s29 = sshll.u32 %s107_s28, 4  ;;  %p731_p0 = pnand %p476_p13, %p697_p4  ;;  %s727_s29 = int_to_ptr.vmem [resolvable:$true] %s117_s29 }
  0x16   : > { %s104_s2 = scalar_lea.sflag [#allocation3], %s103_s22  ;;  %s528_s3 = scalar_lea.hbm %s725_s27, 128 }
  0x17   : > { %p529_p3 = scmp.ne.s32.totalorder %s725_s27, %s528_s3  ;;  %p530_p5 = pneg %p731_p0 }
  0x18   : > { %s533_s12 = scalar_lea.hbm %s932_s0, 256  ;;  %p534_p4 = scmp.lt.u32.totalorder %s725_s27, %s932_s0 }
  0x19   : > { %p531_p6 = pnand %p530_p5, %p529_p3  ;;  %p535_p10 = scmp.lt.u32.totalorder %s533_s12, %s528_s3 }
  0x1a   : > { %p537_p12 = scmp.lt.u32.totalorder %s528_s3, %s725_s27 }
  0x1b   : > { %p532_p7 = pneg %p531_p6  ;;  %p536_p13 = por %p535_p10, %p534_p4 }
  0x1d   : > { %p538_p1 = por %p537_p12, %p536_p13 }
  0x1f   : > { %p539_p2 = pnand %p538_p1, %p532_p7 }
  0x21   : > { %542 = shalt.err (!%p539_p2)
}
  0x22   : > { %s543_s16 = scalar_lea.vmem %s727_s29, 128  ;;  %s642_s17 = smov [#allocation2]  }
  0x23   : > { %p544_p3 = scmp.ne.s32.totalorder %s727_s29, %s543_s16  ;;  %s548_s22 = sshll.u32 %s642_s17, 4  ;;  %s549_s22 = int_to_ptr.vmem [resolvable:$false] %s548_s22 }
  0x24   : > { %s550_s23 = scalar_lea.vmem %s549_s22, 256  ;;  %p551_p9 = scmp.lt.s32.totalorder %s727_s29, %s549_s22 }
  0x25   : > { %p546_p6 = pnand %p544_p3, %p530_p5  ;;  %p552_p4 = scmp.lt.s32.totalorder %s550_s23, %s543_s16 }
  0x27   : > { %p547_p11 = pneg %p546_p6  ;;  %p553_p10 = por %p552_p4, %p551_p9 }
  0x29   : > { %p554_p12 = pnand %p553_p10, %p547_p11 }
  0x2b   : > { %557 = shalt.err (!%p554_p12)
}
  0x2c   : > { %471 = dma.hbm_to_vmem [thread:$0]  (!%p731_p0), %s725_s27, 128, %s727_s29, %s104_s2  }
  0x2d   : > { %p940_p1 = scmp.lt.s32.totalorder %s640_s11, 3  ;;  %p941_p2 = scmp.ge.s32.totalorder %s640_s11, 1 }
  0x2f   : > { %p123_p5 = pnand %p941_p2, %p940_p1 }
  0x30   : > { %s767_s24 = sand.u32 (!%p123_p5), 1, %s624_s7  }
  0x31   : > { %126 = sbr.rel (%p123_p5) target bundleno = 207 (0xcf), region = 24  ;;  %s455_s25 = sshll.u32 (!%p123_p5), %s767_s24, 3 }
  0x32   : > { %s129_s26 = scalar_lea.sflag (!%p123_p5), [#allocation3], %s767_s24  ;;  %s132_s28 = scalar_lea.vmem (!%p123_p5), [#allocation2], %s455_s25 }
  0x38   : > { %611 = dma.done.wait (%p703_p8), %s129_s26, 128  }
  0x39   : > { %613 = vsyncadd (%p703_p8), %s129_s26, 4294967168  ;;  %v153_v0 = vld [vmem:[%s132_s28] sm:$0xff]  ;;  %vm161_vm0 = vcmask 1043456   ;;  %v643_v19 = vmov 0.0   ;;  %s150_s18 = scalar_lea.vmem [#allocation5], %s455_s25  ;;  %s463_s29 = sshll.u32 %s632_s9, 7 }
  0x3a   : > { %v777_v1 = vmax.f32 %v153_v0, 0.0  ;;  %s363_s27 = sshll.u32 %s150_s18, 4  ;;  %s885_s3 = scalar_lea.hbm %s933_s1, %s463_s29  ;;  %s880_s27 = int_to_ptr.vmem [resolvable:$true] %s363_s27 }
  0x3b   : > { %s347_s4 = scalar_lea.sflag [#allocation4], %s767_s24  ;;  %s558_s5 = scalar_lea.vmem %s880_s27, 128 }
  0x3c   : > { %vm156_vm1 = vcmp.lt.f32.partialorder %v777_v1, inf  ;;  %p559_p8 = scmp.ne.s32.totalorder %s880_s27, %s558_s5  ;;  %p948_p9 = scmp.ne.s32.totalorder %s937_s19, 0 }
  0x3d   : > { %v157_v2 = vsel %vm156_vm1, %v777_v1, -inf  ;;  %s645_s9 = smov [#allocation5]  }
  0x3e   : > { %v159_v3 = vcombine.high %v157_v2, %v157_v2  ;;  %v162_v4 = vsel %vm161_vm0, %v157_v2, -inf  ;;  %p560_p11 = pnand %p559_p8, %p948_p9  ;;  %s562_s12 = sshll.u32 %s645_s9, 4  ;;  %s563_s12 = int_to_ptr.vmem [resolvable:$false] %s562_s12 }
  0x3f   : > { %v163_v5 = vrot.slane %v162_v4, 4  ;;  %s564_s13 = scalar_lea.vmem %s563_s12, 256  ;;  %p565_p7 = scmp.lt.s32.totalorder %s880_s27, %s563_s12 }
  0x40   : > { %v169_v6 = vsel %vm161_vm0, %v159_v3, -inf  ;;  %p561_p0 = pneg %p560_p11  ;;  %p566_p13 = scmp.lt.s32.totalorder %s564_s13, %s558_s5 }
  0x41   : > { %v164_v7 = vmax.f32 %v162_v4, %v163_v5  ;;  %v170_v8 = vrot.slane %v169_v6, 4 }
  0x42   : > { %p567_p3 = por %p566_p13, %p565_p7 }
  0x43   : > { %v165_v9 = vrot.slane %v164_v7, 2  ;;  %v171_v10 = vmax.f32 %v169_v6, %v170_v8 }
  0x44   : > { %p568_p6 = pnand %p567_p3, %p561_p0 }
  0x45   : > { %v166_v11 = vmax.f32 %v164_v7, %v165_v9  ;;  %v172_v12 = vrot.slane %v171_v10, 2 }
  0x47   : > { %v167_v13 = vrot.slane %v166_v11, 1  ;;  %v173_v14 = vmax.f32 %v171_v10, %v172_v12 }
  0x49   : > { %v168_v15 = vmax.f32 %v166_v11, %v167_v13  ;;  %v174_v16 = vrot.slane %v173_v14, 1 }
  0x4b   : > { %v785_v17 = vmax.f32 %v173_v14, %v174_v16 }
  0x4d   : > { %v178_v18 = vcombine.low %v168_v15, %v785_v17 }
  0x4f   : > { %vm180_vm2 = vcmp.eq.f32.partialorder %v777_v1, %v178_v18 }
  0x50   : > { %vm181_vm3 = vmand %vm156_vm1, %vm180_vm2 }
  0x51   : > { %v182_v20 = vsel %vm181_vm3, 1.0, %v643_v19  ;;  %vm644_vm3 = vmmov 1  }
  0x52   : > { %v184_v21 = vcombine.high %v182_v20, %v182_v20  ;;  %v186_v22 = vsel %vm161_vm0, %v182_v20, 0.0 }
  0x53   : > { %v187_v23 = vrot.slane %v186_v22, 4 }
  0x54   : > { %v193_v24 = vsel %vm161_vm0, %v184_v21, 0.0 }
  0x55   : > { %v188_v25 = vadd.f32 %v187_v23, %v186_v22  ;;  %v194_v26 = vrot.slane %v193_v24, 4 }
  0x57   : > { %v189_v27 = vrot.slane %v188_v25, 2  ;;  %v195_v28 = vadd.f32 %v194_v26, %v193_v24 }
  0x59   : > { %v190_v29 = vadd.f32 %v189_v27, %v188_v25  ;;  %v196_v30 = vrot.slane %v195_v28, 2 }
  0x5b   : > { %v191_v31 = vrot.slane %v190_v29, 1  ;;  %v197_v32 = vadd.f32 %v196_v30, %v195_v28 }
  0x5d   : > { %v192_v33 = vadd.f32 %v191_v31, %v190_v29  ;;  %v198_v34 = vrot.slane %v197_v32, 1 }
  0x5f   : > { %v199_v35 = vadd.f32 %v198_v34, %v197_v32  ;;  %vm202_vm4 = vcmp.gt.f32.partialorder %v192_v33, 2.5 }
  0x60   : > { %v213_v36 = vsel %vm202_vm4, inf, %v168_v15  ;;  %v209_v7 = vsel %vm202_vm4, %v168_v15, -inf  ;;  %v821_v8 = vsel %vm202_vm4, 0.0, %v192_v33 }
  0x61   : > { %vm203_vm5 = vcmp.gt.f32.partialorder %v199_v35, 2.5  ;;  %vm215_vm9 = vcmp.ne.f32.partialorder %v209_v7, -inf }
  0x62   : > { %v214_v37 = vsel %vm203_vm5, inf, %v785_v17  ;;  %v210_v11 = vsel %vm203_vm5, %v785_v17, -inf  ;;  %v826_v12 = vsel %vm203_vm5, 0.0, %v199_v35  ;;  %vm270_vm4 = vmxor %vm215_vm9, %vm644_vm3 }
  0x63   : > { %v219_v38 = vcombine.low %v213_v36, %v214_v37  ;;  %vm216_vm10 = vcmp.ne.f32.partialorder %v210_v11, -inf }
  0x64   : > { %vm271_vm5 = vmxor %vm216_vm10, %vm644_vm3 }
  0x65   : > { %vm798_vm6 = vcmp.lt.f32.partialorder %v777_v1, %v219_v38 }
  0x66   : > { %v222_v40 = vsel %vm798_vm6, %v777_v1, -inf }
  0x67   : > { %v224_v41 = vcombine.high %v222_v40, %v222_v40  ;;  %v226_v42 = vsel %vm161_vm0, %v222_v40, -inf }
  0x68   : > { %v227_v43 = vrot.slane %v226_v42, 4 }
  0x69   : > { %v233_v44 = vsel %vm161_vm0, %v224_v41, -inf }
  0x6a   : > { %v228_v45 = vmax.f32 %v226_v42, %v227_v43  ;;  %v234_v46 = vrot.slane %v233_v44, 4 }
  0x6c   : > { %v229_v47 = vrot.slane %v228_v45, 2  ;;  %v235_v48 = vmax.f32 %v233_v44, %v234_v46 }
  0x6e   : > { %v230_v49 = vmax.f32 %v228_v45, %v229_v47  ;;  %v236_v50 = vrot.slane %v235_v48, 2 }
  0x70   : > { %v231_v51 = vrot.slane %v230_v49, 1  ;;  %v237_v52 = vmax.f32 %v235_v48, %v236_v50 }
  0x72   : > { %v807_v53 = vmax.f32 %v230_v49, %v231_v51  ;;  %v238_v54 = vrot.slane %v237_v52, 1 }
  0x74   : > { %v809_v55 = vmax.f32 %v237_v52, %v238_v54 }
  0x76   : > { %v242_v56 = vcombine.low %v807_v53, %v809_v55 }
  0x78   : > { %vm244_vm7 = vcmp.eq.f32.partialorder %v777_v1, %v242_v56 }
  0x79   : > { %vm245_vm8 = vmand %vm798_vm6, %vm244_vm7 }
  0x7a   : > { %v246_v57 = vsel %vm245_vm8, 1.0, %v643_v19 }
  0x7b   : > { %v248_v58 = vcombine.high %v246_v57, %v246_v57  ;;  %v250_v59 = vsel %vm161_vm0, %v246_v57, 0.0 }
  0x7c   : > { %v251_v60 = vrot.slane %v250_v59, 4 }
  0x7d   : > { %v257_v61 = vsel %vm161_vm0, %v248_v58, 0.0 }
  0x7e   : > { %v252_v62 = vadd.f32 %v251_v60, %v250_v59  ;;  %v258_v63 = vrot.slane %v257_v61, 4 }
  0x80   : > { %v253_v0 = vrot.slane %v252_v62, 2  ;;  %v259_v2 = vadd.f32 %v258_v63, %v257_v61 }
  0x82   : > { %v254_v3 = vadd.f32 %v253_v0, %v252_v62  ;;  %v260_v4 = vrot.slane %v259_v2, 2 }
  0x84   : > { %v255_v5 = vrot.slane %v254_v3, 1  ;;  %v261_v6 = vadd.f32 %v260_v4, %v259_v2 }
  0x86   : > { %v256_v9 = vadd.f32 %v255_v5, %v254_v3  ;;  %v262_v10 = vrot.slane %v261_v6, 1 }
  0x88   : > { %v263_v13 = vadd.f32 %v262_v10, %v261_v6  ;;  %v264_v14 = vadd.f32 %v256_v9, %v821_v8 }
  0x8a   : > { %v265_v16 = vadd.f32 %v263_v13, %v826_v12  ;;  %vm266_vm11 = vcmp.gt.f32.partialorder %v264_v14, 2.5 }
  0x8b   : > { %vm832_vm12 = vmor %vm215_vm9, %vm266_vm11 }
  0x8c   : > { %vm267_vm13 = vcmp.gt.f32.partialorder %v265_v16, 2.5  ;;  %v278_v17 = vsel %vm832_vm12, %v213_v36, %v807_v53  ;;  %vm272_vm6 = vmand %vm270_vm4, %vm266_vm11  ;;  %v276_v54 = vsel %vm832_vm12, %v821_v8, %v264_v14 }
  0x8d   : > { %vm841_vm14 = vmor %vm216_vm10, %vm267_vm13 }
  0x8e   : > { %v279_v20 = vsel %vm841_vm14, %v214_v37, %v809_v55  ;;  %vm273_vm7 = vmand %vm271_vm5, %vm267_vm13  ;;  %v277_v58 = vsel %vm841_vm14, %v826_v12, %v265_v16 }
  0x8f   : > { %v284_v21 = vcombine.low %v278_v17, %v279_v20  ;;  %v275_v50 = vsel %vm273_vm7, %v809_v55, %v210_v11 }
  0x90   : > { %vm281_vm8 = vcmp.ne.f32.partialorder %v275_v50, -inf }
  0x91   : > { %vm286_vm15 = vcmp.lt.f32.partialorder %v777_v1, %v284_v21  ;;  %vm334_vm11 = vmxor %vm281_vm8, %vm644_vm3 }
  0x92   : > { %v287_v22 = vsel %vm286_vm15, %v777_v1, -inf }
  0x93   : > { %v289_v23 = vcombine.high %v287_v22, %v287_v22  ;;  %v291_v24 = vsel %vm161_vm0, %v287_v22, -inf }
  0x94   : > { %v292_v25 = vrot.slane %v291_v24, 4 }
  0x95   : > { %v298_v26 = vsel %vm161_vm0, %v289_v23, -inf }
  0x96   : > { %v293_v27 = vmax.f32 %v291_v24, %v292_v25  ;;  %v299_v28 = vrot.slane %v298_v26, 4 }
  0x98   : > { %v294_v29 = vrot.slane %v293_v27, 2  ;;  %v300_v30 = vmax.f32 %v298_v26, %v299_v28 }
  0x9a   : > { %v295_v31 = vmax.f32 %v293_v27, %v294_v29  ;;  %v301_v32 = vrot.slane %v300_v30, 2 }
  0x9c   : > { %v296_v33 = vrot.slane %v295_v31, 1  ;;  %v302_v34 = vmax.f32 %v300_v30, %v301_v32 }
  0x9e   : > { %v297_v35 = vmax.f32 %v295_v31, %v296_v33  ;;  %v303_v36 = vrot.slane %v302_v34, 1 }
  0xa0   : > { %v304_v37 = vmax.f32 %v302_v34, %v303_v36 }
  0xa2   : > { %v307_v38 = vcombine.low %v297_v35, %v304_v37 }
  0xa4   : > { %vm309_vm1 = vcmp.eq.f32.partialorder %v777_v1, %v307_v38 }
  0xa5   : > { %vm310_vm2 = vmand %vm286_vm15, %vm309_vm1 }
  0xa6   : > { %v311_v39 = vsel %vm310_vm2, 1.0, %v643_v19  ;;  %v274_v19 = vsel %vm272_vm6, %v807_v53, %v209_v7 }
  0xa7   : > { %v313_v40 = vcombine.high %v311_v39, %v311_v39  ;;  %v315_v41 = vsel %vm161_vm0, %v311_v39, 0.0 }
  0xa8   : > { %v316_v42 = vrot.slane %v315_v41, 4 }
  0xa9   : > { %v322_v43 = vsel %vm161_vm0, %v313_v40, 0.0  ;;  %vm280_vm0 = vcmp.ne.f32.partialorder %v274_v19, -inf }
  0xaa   : > { %v317_v44 = vadd.f32 %v316_v42, %v315_v41  ;;  %v323_v45 = vrot.slane %v322_v43, 4  ;;  %vm333_vm9 = vmxor %vm280_vm0, %vm644_vm3 }
  0xac   : > { %v318_v46 = vrot.slane %v317_v44, 2  ;;  %v324_v47 = vadd.f32 %v323_v45, %v322_v43 }
  0xae   : > { %v319_v48 = vadd.f32 %v318_v46, %v317_v44  ;;  %v325_v49 = vrot.slane %v324_v47, 2 }
  0xb0   : > { %v320_v51 = vrot.slane %v319_v48, 1  ;;  %v326_v52 = vadd.f32 %v325_v49, %v324_v47 }
  0xb2   : > { %v321_v56 = vadd.f32 %v320_v51, %v319_v48  ;;  %v327_v57 = vrot.slane %v326_v52, 1 }
  0xb4   : > { %v328_v53 = vadd.f32 %v327_v57, %v326_v52  ;;  %v329_v59 = vadd.f32 %v321_v56, %v276_v54 }
  0xb6   : > { %v330_v55 = vadd.f32 %v328_v53, %v277_v58  ;;  %vm331_vm10 = vcmp.gt.f32.partialorder %v329_v59, 2.5 }
  0xb7   : > { %vm335_vm12 = vmand %vm333_vm9, %vm331_vm10 }
  0xb8   : > { %vm332_vm13 = vcmp.gt.f32.partialorder %v330_v55, 2.5  ;;  %v337_v60 = vsel %vm335_vm12, %v297_v35, %v274_v19 }
  0xb9   : > { %vm336_vm15 = vmand %vm334_vm11, %vm332_vm13 }
  0xba   : > { %v338_v61 = vsel %vm336_vm15, %v304_v37, %v275_v50 }
  0xbb   : > { %v341_v62 = vcombine.low %v337_v60, %v338_v61 }
  0xbd   : > { %v343_v63 = vsub.f32 %v777_v1, %v341_v62 }
  0xbf   : > { %v344_v0 = vmax.f32 %v343_v63, 0.0 }
  0xc1   : > { %345 = vst [vmem:[%s150_s18] sm:$0xff] %v344_v0 }
  0xc2   : > { %571 = shalt.err (!%p568_p6)
}
  0xc3   : > { %s572_s15 = scalar_lea.hbm %s885_s3, 128  ;;  %s576_s22 = scalar_lea.hbm %s933_s1, 256 }
  0xc4   : > { %p573_p4 = scmp.ne.s32.totalorder %s885_s3, %s572_s15  ;;  %p577_p1 = scmp.lt.u32.totalorder %s885_s3, %s933_s1 }
  0xc5   : > { %p578_p2 = scmp.lt.u32.totalorder %s576_s22, %s572_s15  ;;  %p580_p8 = scmp.lt.u32.totalorder %s572_s15, %s885_s3 }
  0xc6   : > { %p574_p10 = pnand %p573_p4, %p948_p9 }
  0xc7   : > { %p579_p5 = por %p578_p2, %p577_p1 }
  0xc8   : > { %p575_p12 = pneg %p574_p10 }
  0xc9   : > { %p581_p11 = por %p580_p8, %p579_p5 }
  0xcb   : > { %p582_p0 = pnand %p581_p11, %p575_p12 }
  0xcd   : > { %585 = shalt.err (!%p582_p0)
}
  0xce   : > { %466 = dma.vmem_to_hbm [thread:$0]  (%p948_p9), %s880_s27, 128, %s885_s3, %s347_s4  }
  0xcf PF: > { %s375_s25 = sand.u32 1, %s620_s6   ;;  %p949_p7 = scmp.ne.s32.totalorder %s938_s21, 0 }
  0xd0   : > { %p950_p13 = scmp.ge.s32.totalorder %s640_s11, 2  ;;  %s376_s26 = scalar_lea.sflag [#allocation4], %s375_s25 }
  0xd2   : > { %p473_p3 = pnand %p950_p13, %p949_p7 }
  0xd4   : > { %615 = dma.done.wait (!%p473_p3), %s376_s26, 128  }
  0xd5   : > { %617 = vsyncadd (!%p473_p3), %s376_s26, 4294967168  ;;  %s17_s11 = sadd.s32 1, %s640_s11   ;;  %s951_s6 = smov %s624_s7 }
  0xd6   : > { %p14_p6 = scmp.ge.s32.totalorder %s17_s11, 4   ;;  %s952_s7 = smov %s628_s8 }
  0xd7   : > { %s953_s8 = smov %s712_s20  ;;  %s954_s9 = smov %s636_s10 }
  0xd8   : > { %s955_s10 = smov %s957_s14  ;;  %16 = sbr.rel (!%p14_p6) target bundleno = 6 (0x6), region = 69 }
  0xdf   :  { %381 = vsyncpa [#allocation3], 1 }
  0xe0   :  { %383 = vsyncpa [#allocation3 + $0x1], 1 }
  0xe1   :  { %384 = vsyncpa [#allocation4], 1 }
  0xe2   :  { %386 = vsyncpa [#allocation4 + $0x1], 1 }

</bundles_post_ra>
